<compile_context>
chip_gen: v6e
topology: v6e:2x2x1
jax: 0.10.0
libtpu: 0.0.40
codegen_flags: <defaults>
</compile_context>

<pallas_src>
import jax
import jax.numpy as jnp
from jax.experimental import pallas as pl
from jax.experimental.pallas import tpu as pltpu


def _copy_kernel(x_ref, o_ref):
    # Pure tile copy: one (TR, C) block per grid step.
    o_ref[...] = x_ref[...]


def _lane_dense_shape(B, D):
    """Pick a (rows, cols) view of the same contiguous data with cols % 128 == 0
    when possible (free reshape; avoids masked partial loads/stores)."""
    if D % 128 == 0:
        return B, D
    total = B * D
    for w in (4096, 2048, 1024, 512, 256, 128):
        if total % w == 0:
            return total // w, w
    return B, D  # tiny / odd sizes: full-array block, masking is irrelevant


def _pallas_copy2d(x2d, *, target_tile_bytes=4 * 1024 * 1024):
    """Tiled, pipelined HBM->HBM copy of a 2-D slab."""
    R, C = x2d.shape
    itemsize = jnp.dtype(x2d.dtype).itemsize

    # Sublane packing: 8 rows (f32), 16 (bf16), 32 (int8/fp8).
    sublane = 8 * max(1, 4 // itemsize)

    row_bytes = max(1, C * itemsize)
    rows_fit = max(1, target_tile_bytes // row_bytes)
    if rows_fit >= R:
        tr = R                                   # full extent: always legal
    else:
        tr = max(sublane, (rows_fit // sublane) * sublane)

    grid = (pl.cdiv(R, tr),)

    return pl.pallas_call(
        _copy_kernel,
        out_shape=jax.ShapeDtypeStruct((R, C), x2d.dtype),
        grid=grid,
        in_specs=[pl.BlockSpec((tr, C), lambda i: (i, 0))],
        out_specs=pl.BlockSpec((tr, C), lambda i: (i, 0)),
        compiler_params=pltpu.CompilerParams(
            # "parallel": lets v7x shard the grid across its 2 TensorCores.
            dimension_semantics=("parallel",),
            # Explicit limit: ~4 MiB tiles * (2 in-bufs + 2 out-bufs) << 32 MiB,
            # safe on v5e (16 MiB default), v6e and v7x (64 MiB physical VMEM).
            vmem_limit_bytes=32 * 1024 * 1024,
        ),
    )(x2d)


def receiver_forward(x, _input=None, *, use_pallas=True):
    """Pallas equivalent of Receiver.forward: returns x with axis 1 (size 1) removed.

    `_input` is accepted for signature parity but (as in the PyTorch module) unused.
    With use_pallas=False this is the recommended zero-cost path (pure metadata op).
    """
    assert x.ndim == 3 and x.shape[1] == 1, "expected x of shape (B, 1, D)"
    B, _, D = x.shape

    if not use_pallas:
        # Preferred: squeeze is a zero-data-movement layout change in XLA.
        return jnp.squeeze(x, axis=1)

    # Layout plumbing (free): drop the size-1 axis and present a lane-dense slab.
    R, C = _lane_dense_shape(B, D)
    x2d = jnp.reshape(x, (R, C))
    out2d = _pallas_copy2d(x2d)
    return jnp.reshape(out2d, (B, D))


if __name__ == "__main__":
    key = jax.random.PRNGKey(0)
    kx, ki = jax.random.split(key)

    B, D = 2, 32
    x = jax.random.normal(kx, (B, 1, D), dtype=jnp.float32)
    _input = jax.random.normal(ki, (B, 8), dtype=jnp.float32)  # unused, parity only

    # Pallas path (tiled copy kernel).
    out = receiver_forward(x, _input, use_pallas=True)
    out = jax.block_until_ready(out)

    # Zero-cost reference path + exact PyTorch semantics (x.squeeze(1)).
    ref = jnp.squeeze(x, axis=1)
    fast = jax.block_until_ready(receiver_forward(x, _input, use_pallas=False))

    assert out.shape == (B, D), f"bad shape {out.shape}"
    assert out.dtype == x.dtype
    assert jnp.array_equal(out, ref), "pallas path mismatch vs squeeze reference"
    assert jnp.array_equal(fast, ref), "fast path mismatch vs squeeze reference"

    print("KERNEL_OK")
</pallas_src>

<mosaic_0001>
module attributes {stable_mosaic.version = 11 : i64} {
  func.func @_copy_kernel(%arg0: i32, %arg1: memref<2x32xf32, #tpu.memory_space<vmem>>, %arg2: memref<2x32xf32, #tpu.memory_space<vmem>>) attributes {dimension_semantics = [#tpu.dimension_semantics<parallel>], iteration_bounds = array<i64: 1>, scalar_prefetch = 0 : i64, scratch_operands = 0 : i64, tpu.core_type = #tpu.core_type<tc>, window_params = [{transform_indices = @transform_0, window_bounds = array<i64: 2, 32>}, {transform_indices = @transform_1, window_bounds = array<i64: 2, 32>}]} {
    %c0 = arith.constant 0 : index
    %c0_0 = arith.constant 0 : index
    %0 = vector.load %arg1[%c0, %c0_0] : memref<2x32xf32, #tpu.memory_space<vmem>>, vector<2x32xf32>
    %c0_1 = arith.constant 0 : index
    %c0_2 = arith.constant 0 : index
    %1 = vector.load %arg2[%c0_1, %c0_2] : memref<2x32xf32, #tpu.memory_space<vmem>>, vector<2x32xf32>
    tpu.vector_store %arg2[%c0_1, %c0_2], %0 {strides = array<i32>} : memref<2x32xf32, #tpu.memory_space<vmem>>, vector<2x32xf32>,
    return
  }
  func.func @transform_0(%arg0: i32) -> (i32, i32) {
    %c0_i32 = arith.constant 0 : i32
    %c0_i32_0 = arith.constant 0 : i32
    return %arg0, %c0_i32 : i32, i32
  }
  func.func @transform_1(%arg0: i32) -> (i32, i32) {
    %c0_i32 = arith.constant 0 : i32
    %c0_i32_0 = arith.constant 0 : i32
    return %arg0, %c0_i32 : i32, i32
  }
}

</mosaic_0001>

<bundles_post_ra>
// kernel: tpu_custom_call.1
= control target key start
LH: loop header
LB: loop body
LE: loop exit
PB: predicated region body
PF: predicated region fallthrough
CT: control target
= control target key end

     0   :  { %6 = vsyncpa [#allocation3], 0  ;;  %s103_s0 = inlined_call_operand.hbm [shape: f32[2,32], index: 0, kind: input, shape index: {}]   ;;  %s104_s1 = inlined_call_operand.hbm [shape: f32[2,32], index: 1, kind: output, shape index: {}]  }
   0x1   :  { %7 = vsyncpa [#allocation4], 0  ;;  %s85_s6 = smov [#allocation2]  }
   0x2   :  { %s14_s7 = sshll.u32 %s85_s6, 4  ;;  %s15_s7 = int_to_ptr.vmem [resolvable:$true] %s14_s7 }
   0x3   :  { %s49_s8 = scalar_lea.vmem %s15_s7, 32  ;;  %p54_p1 = scmp.lt.s32.totalorder %s15_s7, %s15_s7 }
   0x4   :  { %p50_p0 = scmp.ne.s32.totalorder %s15_s7, %s49_s8  ;;  %p55_p2 = scmp.lt.s32.totalorder %s49_s8, %s49_s8 }
   0x6   :  { %p56_p3 = por %p55_p2, %p54_p1 }
   0x8   :  { %p57_p4 = pnand %p56_p3, %p50_p0 }
   0xa   :  { %60 = shalt.err (!%p57_p4)
}
   0xb   :  { %17 = dma.hbm_to_vmem [thread:$0]  %s103_s0, 32, %s15_s7, [#allocation3]  }
   0xc   :  { %81 = dma.done.wait [#allocation3], 32  }
   0xd   :  { %82 = vsyncadd [#allocation3], 4294967264  ;;  %s86_s11 = smov [#allocation5]   ;;  %vm22_vm0 = vcmask 254976   ;;  %v21_v0 = vld [vmem:[#allocation2] sm:$0x3] }
   0xe   :  { %s30_s12 = sshll.u32 %s86_s11, 4  ;;  %23 = vst.msk [vmem:[#allocation5] sm:$0x3] %vm22_vm0, %v21_v0  ;;  %s31_s12 = int_to_ptr.vmem [resolvable:$true] %s30_s12 }
   0xf   :  { %s61_s13 = scalar_lea.vmem %s31_s12, 32  ;;  %p66_p6 = scmp.lt.s32.totalorder %s31_s12, %s31_s12 }
  0x10   :  { %p62_p5 = scmp.ne.s32.totalorder %s31_s12, %s61_s13  ;;  %p67_p7 = scmp.lt.s32.totalorder %s61_s13, %s61_s13 }
  0x12   :  { %p68_p8 = por %p67_p7, %p66_p6 }
  0x14   :  { %p69_p9 = pnand %p68_p8, %p62_p5 }
  0x16   :  { %72 = shalt.err (!%p69_p9)
}
  0x17   :  { %33 = dma.vmem_to_hbm [thread:$0]  %s31_s12, 32, %s104_s1, [#allocation4]  }
  0x18   :  { %83 = dma.done.wait [#allocation4], 32  }
  0x19   :  { %84 = vsyncadd [#allocation4], 4294967264 }
  0x1a   :  { %37 = vsyncpa [#allocation3], 1 }
  0x1b   :  { %38 = vsyncpa [#allocation4], 1 }

</bundles_post_ra>
